<compile_context>
chip_gen: v7x
topology: tpu7x:2x2x1
jax: 0.10.0
libtpu: 0.0.40
codegen_flags: <defaults>
</compile_context>

<pallas_src>
import functools

import jax
import jax.numpy as jnp
from jax.experimental import pallas as pl
from jax.experimental.pallas import tpu as pltpu

F_IN = 48       # per-endpoint feature size
F_CAT = 96      # 48 * 2
F_HID = 128
F_OUT = 128
BN_EPS = 1e-5


def _round_up(x, m):
    return ((x + m - 1) // m) * m


def edge_block_kernel(src_ref, dest_ref,
                      w1a_ref, w1b_ref, b1_ref,
                      gamma_ref, beta_ref,
                      w2_ref, b2_ref,
                      out_ref,
                      sum_ref, sq_ref,
                      *, n_edges, tile_e):
    phase = pl.program_id(0)   # 0: accumulate BN stats, 1: normalize + second matmul
    t = pl.program_id(1)       # edge-tile index

    # --- Linear(96, 128) on cat([src, dest], 1), as a split matmul (both phases) ---
    src = src_ref[...].astype(jnp.float32)     # (TE, 48)
    dest = dest_ref[...].astype(jnp.float32)   # (TE, 48)
    h = jnp.dot(src, w1a_ref[...], preferred_element_type=jnp.float32)
    h = h + jnp.dot(dest, w1b_ref[...], preferred_element_type=jnp.float32)
    h = h + b1_ref[...]                        # (TE, 128)

    @pl.when(phase == 0)
    def _stats():
        @pl.when(t == 0)
        def _init():
            sum_ref[...] = jnp.zeros_like(sum_ref)
            sq_ref[...] = jnp.zeros_like(sq_ref)
        # Mask padded rows of the (possibly ragged) last tile out of the stats.
        row = t * tile_e + jax.lax.broadcasted_iota(jnp.int32, (tile_e, 1), 0)
        hm = jnp.where(row < n_edges, h, 0.0)
        sum_ref[...] += jnp.sum(hm, axis=0, keepdims=True)        # (1, 128)
        sq_ref[...] += jnp.sum(hm * hm, axis=0, keepdims=True)    # (1, 128)

    @pl.when(phase == 1)
    def _apply():
        # BN folded into a single per-feature scale/shift (biased variance, true-E divisor).
        inv_n = jnp.float32(1.0 / n_edges)
        mean = sum_ref[...] * inv_n                                # (1, 128)
        var = sq_ref[...] * inv_n - mean * mean                    # E[h^2] - mean^2
        scale = gamma_ref[...] * jax.lax.rsqrt(var + BN_EPS)
        shift = beta_ref[...] - mean * scale
        a = jnp.maximum(h * scale + shift, 0.0)                    # BN + ReLU, 2 VPU ops/elem
        out = jnp.dot(a, w2_ref[...], preferred_element_type=jnp.float32) + b2_ref[...]
        out_ref[...] = out.astype(out_ref.dtype)


def edge_block(src, dest, params, *, tile_e=512):
    E = src.shape[0]
    te = min(tile_e, _round_up(E, 8))          # sublane-aligned edge tile
    num_tiles = pl.cdiv(E, te)

    kernel = functools.partial(edge_block_kernel, n_edges=E, tile_e=te)

    edge_in_spec = pl.BlockSpec((te, F_IN), lambda p, t: (t, 0))
    # Weights / biases: constant block index -> resident in VMEM, DMA'd once.
    w1_spec = pl.BlockSpec((F_IN, F_HID), lambda p, t: (0, 0))
    vec_spec = pl.BlockSpec((1, F_HID), lambda p, t: (0, 0))
    w2_spec = pl.BlockSpec((F_HID, F_OUT), lambda p, t: (0, 0))
    b2_spec = pl.BlockSpec((1, F_OUT), lambda p, t: (0, 0))
    # Output block index stays 0 for the whole stats phase (no write-back there),
    # then advances tile-by-tile in phase 1.
    out_spec = pl.BlockSpec((te, F_OUT), lambda p, t: (p * t, 0))

    grid_spec = pltpu.PrefetchScalarGridSpec(
        num_scalar_prefetch=0,
        grid=(2, num_tiles),
        in_specs=[
            edge_in_spec, edge_in_spec,          # src, dest
            w1_spec, w1_spec, vec_spec,          # w1a, w1b, b1
            vec_spec, vec_spec,                  # gamma, beta
            w2_spec, b2_spec,                    # w2, b2
        ],
        out_specs=out_spec,
        scratch_shapes=[
            pltpu.VMEM((1, F_HID), jnp.float32),   # running sum   of h per feature
            pltpu.VMEM((1, F_HID), jnp.float32),   # running sum   of h^2 per feature
        ],
    )

    return pl.pallas_call(
        kernel,
        out_shape=jax.ShapeDtypeStruct((E, F_OUT), jnp.float32),
        grid_spec=grid_spec,
        compiler_params=pltpu.CompilerParams(
            # Phase ordering and cross-tile stats accumulation require sequential axes.
            dimension_semantics=("arbitrary", "arbitrary"),
        ),
    )(src, dest,
      params["w1a"], params["w1b"], params["b1"],
      params["gamma"], params["beta"],
      params["w2"], params["b2"])


def init_params(key):
    # Deterministic synthetic init (mimics PyTorch Linear uniform ranges).
    k1, k2, k3, k4 = jax.random.split(key, 4)
    bound1 = 1.0 / jnp.sqrt(F_CAT)
    bound2 = 1.0 / jnp.sqrt(F_HID)
    w1 = jax.random.uniform(k1, (F_CAT, F_HID), jnp.float32, -bound1, bound1)
    b1 = jax.random.uniform(k2, (1, F_HID), jnp.float32, -bound1, bound1)
    w2 = jax.random.uniform(k3, (F_HID, F_OUT), jnp.float32, -bound2, bound2)
    b2 = jax.random.uniform(k4, (1, F_OUT), jnp.float32, -bound2, bound2)
    return {
        "w1a": w1[:F_IN],            # (48, 128)
        "w1b": w1[F_IN:],            # (48, 128)
        "b1": b1,                    # (1, 128)
        "gamma": jnp.ones((1, F_HID), jnp.float32),   # BN weight init = 1
        "beta": jnp.zeros((1, F_HID), jnp.float32),   # BN bias init = 0
        "w2": w2,                    # (128, 128)
        "b2": b2,                    # (1, 128)
    }


def reference(src, dest, p):
    x = jnp.concatenate([src, dest], axis=1)
    h = x @ jnp.concatenate([p["w1a"], p["w1b"]], axis=0) + p["b1"]
    mean = jnp.mean(h, axis=0, keepdims=True)
    var = jnp.mean((h - mean) ** 2, axis=0, keepdims=True)
    h = (h - mean) / jnp.sqrt(var + BN_EPS) * p["gamma"] + p["beta"]
    h = jnp.maximum(h, 0.0)
    return h @ p["w2"] + p["b2"]


if __name__ == "__main__":
    key = jax.random.PRNGKey(0)
    k_src, k_dest, k_param = jax.random.split(key, 3)
    params = init_params(k_param)

    # Case 1: tiny batch, single tile.
    E1 = 8
    src1 = jax.random.normal(k_src, (E1, F_IN), jnp.float32)
    dest1 = jax.random.normal(k_dest, (E1, F_IN), jnp.float32)
    out1 = jax.block_until_ready(edge_block(src1, dest1, params))
    ref1 = reference(src1, dest1, params)
    assert out1.shape == (E1, F_OUT)
    assert jnp.allclose(out1, ref1, atol=1e-4, rtol=1e-4), \
        float(jnp.max(jnp.abs(out1 - ref1)))

    # Case 2: multiple tiles + ragged last tile (exercises masking and the
    # streaming two-phase BatchNorm path).
    E2 = 20
    src2 = jax.random.normal(jax.random.fold_in(k_src, 1), (E2, F_IN), jnp.float32)
    dest2 = jax.random.normal(jax.random.fold_in(k_dest, 1), (E2, F_IN), jnp.float32)
    out2 = jax.block_until_ready(edge_block(src2, dest2, params, tile_e=8))
    ref2 = reference(src2, dest2, params)
    assert out2.shape == (E2, F_OUT)
    assert jnp.allclose(out2, ref2, atol=1e-4, rtol=1e-4), \
        float(jnp.max(jnp.abs(out2 - ref2)))

    print("KERNEL_OK")
</pallas_src>

<mosaic_0001>
module attributes {stable_mosaic.version = 11 : i64} {
  func.func @edge_block_kernel(%arg0: i32, %arg1: i32, %arg2: memref<8x48xf32, #tpu.memory_space<vmem>>, %arg3: memref<8x48xf32, #tpu.memory_space<vmem>>, %arg4: memref<48x128xf32, #tpu.memory_space<vmem>>, %arg5: memref<48x128xf32, #tpu.memory_space<vmem>>, %arg6: memref<1x128xf32, #tpu.memory_space<vmem>>, %arg7: memref<1x128xf32, #tpu.memory_space<vmem>>, %arg8: memref<1x128xf32, #tpu.memory_space<vmem>>, %arg9: memref<128x128xf32, #tpu.memory_space<vmem>>, %arg10: memref<1x128xf32, #tpu.memory_space<vmem>>, %arg11: memref<8x128xf32, #tpu.memory_space<vmem>>, %arg12: memref<1x128xf32, #tpu.memory_space<vmem>>, %arg13: memref<1x128xf32, #tpu.memory_space<vmem>>) attributes {dimension_semantics = [#tpu.dimension_semantics<arbitrary>, #tpu.dimension_semantics<arbitrary>], iteration_bounds = array<i64: 2, 1>, scalar_prefetch = 0 : i64, scratch_operands = 2 : i64, tpu.core_type = #tpu.core_type<tc>, window_params = [{transform_indices = @transform_0, window_bounds = array<i64: 8, 48>}, {transform_indices = @transform_1, window_bounds = array<i64: 8, 48>}, {pipeline_mode = #tpu.pipeline_mode<synchronous>, transform_indices = @transform_2, window_bounds = array<i64: 48, 128>}, {pipeline_mode = #tpu.pipeline_mode<synchronous>, transform_indices = @transform_3, window_bounds = array<i64: 48, 128>}, {pipeline_mode = #tpu.pipeline_mode<synchronous>, transform_indices = @transform_4, window_bounds = array<i64: 1, 128>}, {pipeline_mode = #tpu.pipeline_mode<synchronous>, transform_indices = @transform_5, window_bounds = array<i64: 1, 128>}, {pipeline_mode = #tpu.pipeline_mode<synchronous>, transform_indices = @transform_6, window_bounds = array<i64: 1, 128>}, {pipeline_mode = #tpu.pipeline_mode<synchronous>, transform_indices = @transform_7, window_bounds = array<i64: 128, 128>}, {pipeline_mode = #tpu.pipeline_mode<synchronous>, transform_indices = @transform_8, window_bounds = array<i64: 1, 128>}, {transform_indices = @transform_9, window_bounds = array<i64: 8, 128>}]} {
    %c0 = arith.constant 0 : index
    %c0_0 = arith.constant 0 : index
    %0 = vector.load %arg2[%c0, %c0_0] : memref<8x48xf32, #tpu.memory_space<vmem>>, vector<8x48xf32>
    %c0_1 = arith.constant 0 : index
    %c0_2 = arith.constant 0 : index
    %1 = vector.load %arg3[%c0_1, %c0_2] : memref<8x48xf32, #tpu.memory_space<vmem>>, vector<8x48xf32>
    %c0_3 = arith.constant 0 : index
    %c0_4 = arith.constant 0 : index
    %2 = vector.load %arg4[%c0_3, %c0_4] : memref<48x128xf32, #tpu.memory_space<vmem>>, vector<48x128xf32>
    %cst = arith.constant dense<0.000000e+00> : vector<8x128xf32>
    %3 = tpu.matmul %0, %2, %cst {dimension_numbers = #tpu.dot_dimension_numbers<[1], [0], [0], [1], [0, 0, 1, 1], [], []>} : vector<8x48xf32>, vector<48x128xf32>, vector<8x128xf32> -> vector<8x128xf32>
    %c0_5 = arith.constant 0 : index
    %c0_6 = arith.constant 0 : index
    %4 = vector.load %arg5[%c0_5, %c0_6] : memref<48x128xf32, #tpu.memory_space<vmem>>, vector<48x128xf32>
    %cst_7 = arith.constant dense<0.000000e+00> : vector<8x128xf32>
    %5 = tpu.matmul %1, %4, %cst_7 {dimension_numbers = #tpu.dot_dimension_numbers<[1], [0], [0], [1], [0, 0, 1, 1], [], []>} : vector<8x48xf32>, vector<48x128xf32>, vector<8x128xf32> -> vector<8x128xf32>
    %6 = arith.addf %3, %5 : vector<8x128xf32>
    %c0_8 = arith.constant 0 : index
    %c0_9 = arith.constant 0 : index
    %7 = vector.load %arg6[%c0_8, %c0_9] : memref<1x128xf32, #tpu.memory_space<vmem>>, vector<1x128xf32>
    %8 = vector.broadcast %7 : vector<1x128xf32> to vector<8x128xf32>
    %9 = arith.addf %6, %8 : vector<8x128xf32>
    %c0_i32 = arith.constant 0 : i32
    %10 = arith.cmpi eq, %arg0, %c0_i32 : i32
    %11 = arith.extui %10 : i1 to i32
    %c0_i32_10 = arith.constant 0 : i32
    %12 = arith.cmpi ne, %11, %c0_i32_10 : i32
    scf.if %12 {
      %c0_i32_12 = arith.constant 0 : i32
      %16 = arith.cmpi eq, %arg1, %c0_i32_12 : i32
      %17 = arith.extui %16 : i1 to i32
      %c0_i32_13 = arith.constant 0 : i32
      %18 = arith.cmpi ne, %17, %c0_i32_13 : i32
      scf.if %18 {
        %cst_26 = arith.constant 0.000000e+00 : f32
        %40 = vector.broadcast %cst_26 : f32 to vector<1x128xf32>
        %c0_27 = arith.constant 0 : index
        %c0_28 = arith.constant 0 : index
        %41 = vector.load %arg12[%c0_27, %c0_28] : memref<1x128xf32, #tpu.memory_space<vmem>>, vector<1x128xf32>
        tpu.vector_store %arg12[%c0_27, %c0_28], %40 {strides = array<i32>} : memref<1x128xf32, #tpu.memory_space<vmem>>, vector<1x128xf32>,
        %cst_29 = arith.constant 0.000000e+00 : f32
        %42 = vector.broadcast %cst_29 : f32 to vector<1x128xf32>
        %c0_30 = arith.constant 0 : index
        %c0_31 = arith.constant 0 : index
        %43 = vector.load %arg13[%c0_30, %c0_31] : memref<1x128xf32, #tpu.memory_space<vmem>>, vector<1x128xf32>
        tpu.vector_store %arg13[%c0_30, %c0_31], %42 {strides = array<i32>} : memref<1x128xf32, #tpu.memory_space<vmem>>, vector<1x128xf32>,
      } else {
      }
      %c8_i32 = arith.constant 8 : i32
      %19 = arith.muli %arg1, %c8_i32 : i32
      %20 = tpu.iota {dimensions = array<i32: 0>} : vector<8x1xi32>
      %21 = vector.broadcast %19 : i32 to vector<8x1xi32>
      %22 = arith.addi %21, %20 : vector<8x1xi32>
      %c8_i32_14 = arith.constant 8 : i32
      %23 = vector.broadcast %c8_i32_14 : i32 to vector<8x1xi32>
      %24 = arith.cmpi slt, %22, %23 : vector<8x1xi32>
      %cst_15 = arith.constant 0.000000e+00 : f32
      %25 = vector.shape_cast %24 : vector<8x1xi1> to vector<8x1xi1>
      %26 = vector.broadcast %25 : vector<8x1xi1> to vector<8x128xi1>
      %27 = vector.broadcast %cst_15 : f32 to vector<8x128xf32>
      %28 = arith.select %26, %9, %27 : vector<8x128xi1>, vector<8x128xf32>
      %c0_16 = arith.constant 0 : index
      %c0_17 = arith.constant 0 : index
      %29 = vector.load %arg12[%c0_16, %c0_17] : memref<1x128xf32, #tpu.memory_space<vmem>>, vector<1x128xf32>
      %cst_18 = arith.constant dense<0.000000e+00> : vector<128xf32>
      %30 = vector.multi_reduction <add>, %28, %cst_18 [0] : vector<8x128xf32> to vector<128xf32>
      %31 = vector.shape_cast %30 : vector<128xf32> to vector<1x128xf32>
      %32 = arith.addf %29, %31 : vector<1x128xf32>
      %c0_19 = arith.constant 0 : index
      %c0_20 = arith.constant 0 : index
      %33 = vector.load %arg12[%c0_19, %c0_20] : memref<1x128xf32, #tpu.memory_space<vmem>>, vector<1x128xf32>
      tpu.vector_store %arg12[%c0_19, %c0_20], %32 {strides = array<i32>} : memref<1x128xf32, #tpu.memory_space<vmem>>, vector<1x128xf32>,
      %c0_21 = arith.constant 0 : index
      %c0_22 = arith.constant 0 : index
      %34 = vector.load %arg13[%c0_21, %c0_22] : memref<1x128xf32, #tpu.memory_space<vmem>>, vector<1x128xf32>
      %35 = arith.mulf %28, %28 : vector<8x128xf32>
      %cst_23 = arith.constant dense<0.000000e+00> : vector<128xf32>
      %36 = vector.multi_reduction <add>, %35, %cst_23 [0] : vector<8x128xf32> to vector<128xf32>
      %37 = vector.shape_cast %36 : vector<128xf32> to vector<1x128xf32>
      %38 = arith.addf %34, %37 : vector<1x128xf32>
      %c0_24 = arith.constant 0 : index
      %c0_25 = arith.constant 0 : index
      %39 = vector.load %arg13[%c0_24, %c0_25] : memref<1x128xf32, #tpu.memory_space<vmem>>, vector<1x128xf32>
      tpu.vector_store %arg13[%c0_24, %c0_25], %38 {strides = array<i32>} : memref<1x128xf32, #tpu.memory_space<vmem>>, vector<1x128xf32>,
    } else {
    }
    %c1_i32 = arith.constant 1 : i32
    %13 = arith.cmpi eq, %arg0, %c1_i32 : i32
    %14 = arith.extui %13 : i1 to i32
    %c0_i32_11 = arith.constant 0 : i32
    %15 = arith.cmpi ne, %14, %c0_i32_11 : i32
    scf.if %15 {
      %c0_12 = arith.constant 0 : index
      %c0_13 = arith.constant 0 : index
      %16 = vector.load %arg12[%c0_12, %c0_13] : memref<1x128xf32, #tpu.memory_space<vmem>>, vector<1x128xf32>
      %cst_14 = arith.constant 1.250000e-01 : f32
      %17 = vector.broadcast %cst_14 : f32 to vector<1x128xf32>
      %18 = arith.mulf %16, %17 : vector<1x128xf32>
      %c0_15 = arith.constant 0 : index
      %c0_16 = arith.constant 0 : index
      %19 = vector.load %arg13[%c0_15, %c0_16] : memref<1x128xf32, #tpu.memory_space<vmem>>, vector<1x128xf32>
      %cst_17 = arith.constant 1.250000e-01 : f32
      %20 = vector.broadcast %cst_17 : f32 to vector<1x128xf32>
      %21 = arith.mulf %19, %20 : vector<1x128xf32>
      %22 = arith.mulf %18, %18 : vector<1x128xf32>
      %23 = arith.subf %21, %22 : vector<1x128xf32>
      %c0_18 = arith.constant 0 : index
      %c0_19 = arith.constant 0 : index
      %24 = vector.load %arg7[%c0_18, %c0_19] : memref<1x128xf32, #tpu.memory_space<vmem>>, vector<1x128xf32>
      %cst_20 = arith.constant 9.99999974E-6 : f32
      %25 = vector.broadcast %cst_20 : f32 to vector<1x128xf32>
      %26 = arith.addf %23, %25 : vector<1x128xf32>
      %27 = math.rsqrt %26 : vector<1x128xf32>
      %28 = arith.mulf %24, %27 : vector<1x128xf32>
      %c0_21 = arith.constant 0 : index
      %c0_22 = arith.constant 0 : index
      %29 = vector.load %arg8[%c0_21, %c0_22] : memref<1x128xf32, #tpu.memory_space<vmem>>, vector<1x128xf32>
      %30 = arith.mulf %18, %28 : vector<1x128xf32>
      %31 = arith.subf %29, %30 : vector<1x128xf32>
      %32 = vector.broadcast %28 : vector<1x128xf32> to vector<8x128xf32>
      %33 = arith.mulf %9, %32 : vector<8x128xf32>
      %34 = vector.broadcast %31 : vector<1x128xf32> to vector<8x128xf32>
      %35 = arith.addf %33, %34 : vector<8x128xf32>
      %cst_23 = arith.constant 0.000000e+00 : f32
      %36 = vector.broadcast %cst_23 : f32 to vector<8x128xf32>
      %37 = arith.maximumf %35, %36 : vector<8x128xf32>
      %c0_24 = arith.constant 0 : index
      %c0_25 = arith.constant 0 : index
      %38 = vector.load %arg9[%c0_24, %c0_25] : memref<128x128xf32, #tpu.memory_space<vmem>>, vector<128x128xf32>
      %cst_26 = arith.constant dense<0.000000e+00> : vector<8x128xf32>
      %39 = tpu.matmul %37, %38, %cst_26 {dimension_numbers = #tpu.dot_dimension_numbers<[1], [0], [0], [1], [0, 0, 1, 1], [], []>} : vector<8x128xf32>, vector<128x128xf32>, vector<8x128xf32> -> vector<8x128xf32>
      %c0_27 = arith.constant 0 : index
      %c0_28 = arith.constant 0 : index
      %40 = vector.load %arg10[%c0_27, %c0_28] : memref<1x128xf32, #tpu.memory_space<vmem>>, vector<1x128xf32>
      %41 = vector.broadcast %40 : vector<1x128xf32> to vector<8x128xf32>
      %42 = arith.addf %39, %41 : vector<8x128xf32>
      %c0_29 = arith.constant 0 : index
      %c0_30 = arith.constant 0 : index
      %43 = vector.load %arg11[%c0_29, %c0_30] : memref<8x128xf32, #tpu.memory_space<vmem>>, vector<8x128xf32>
      tpu.vector_store %arg11[%c0_29, %c0_30], %42 {strides = array<i32>} : memref<8x128xf32, #tpu.memory_space<vmem>>, vector<8x128xf32>,
    } else {
    }
    return
  }
  func.func @transform_0(%arg0: i32, %arg1: i32) -> (i32, i32) {
    %c0_i32 = arith.constant 0 : i32
    %c0_i32_0 = arith.constant 0 : i32
    return %arg1, %c0_i32 : i32, i32
  }
  func.func @transform_1(%arg0: i32, %arg1: i32) -> (i32, i32) {
    %c0_i32 = arith.constant 0 : i32
    %c0_i32_0 = arith.constant 0 : i32
    return %arg1, %c0_i32 : i32, i32
  }
  func.func @transform_2(%arg0: i32, %arg1: i32) -> (i32, i32) {
    %c0_i32 = arith.constant 0 : i32
    %c0_i32_0 = arith.constant 0 : i32
    %c0_i32_1 = arith.constant 0 : i32
    return %c0_i32, %c0_i32_0 : i32, i32
  }
  func.func @transform_3(%arg0: i32, %arg1: i32) -> (i32, i32) {
    %c0_i32 = arith.constant 0 : i32
    %c0_i32_0 = arith.constant 0 : i32
    %c0_i32_1 = arith.constant 0 : i32
    return %c0_i32, %c0_i32_0 : i32, i32
  }
  func.func @transform_4(%arg0: i32, %arg1: i32) -> (i32, i32) {
    %c0_i32 = arith.constant 0 : i32
    %c0_i32_0 = arith.constant 0 : i32
    %c0_i32_1 = arith.constant 0 : i32
    return %c0_i32, %c0_i32_0 : i32, i32
  }
  func.func @transform_5(%arg0: i32, %arg1: i32) -> (i32, i32) {
    %c0_i32 = arith.constant 0 : i32
    %c0_i32_0 = arith.constant 0 : i32
    %c0_i32_1 = arith.constant 0 : i32
    return %c0_i32, %c0_i32_0 : i32, i32
  }
  func.func @transform_6(%arg0: i32, %arg1: i32) -> (i32, i32) {
    %c0_i32 = arith.constant 0 : i32
    %c0_i32_0 = arith.constant 0 : i32
    %c0_i32_1 = arith.constant 0 : i32
    return %c0_i32, %c0_i32_0 : i32, i32
  }
  func.func @transform_7(%arg0: i32, %arg1: i32) -> (i32, i32) {
    %c0_i32 = arith.constant 0 : i32
    %c0_i32_0 = arith.constant 0 : i32
    %c0_i32_1 = arith.constant 0 : i32
    return %c0_i32, %c0_i32_0 : i32, i32
  }
  func.func @transform_8(%arg0: i32, %arg1: i32) -> (i32, i32) {
    %c0_i32 = arith.constant 0 : i32
    %c0_i32_0 = arith.constant 0 : i32
    %c0_i32_1 = arith.constant 0 : i32
    return %c0_i32, %c0_i32_0 : i32, i32
  }
  func.func @transform_9(%arg0: i32, %arg1: i32) -> (i32, i32) {
    %0 = arith.muli %arg0, %arg1 : i32
    %c0_i32 = arith.constant 0 : i32
    %c0_i32_0 = arith.constant 0 : i32
    return %0, %c0_i32 : i32, i32
  }
}

</mosaic_0001>

<bundles_post_ra>
// kernel: tpu_custom_call.1
= control target key start
LH: loop header
LB: loop body
LE: loop exit
PB: predicated region body
PF: predicated region fallthrough
CT: control target
= control target key end

     0   :  { %14 = vsyncpa [#allocation5], 0  ;;  %s1620_s0 = inlined_call_operand.hbm [shape: f32[8,48], index: 0, kind: input, shape index: {}]   ;;  %s1621_s1 = inlined_call_operand.hbm [shape: f32[8,48], index: 1, kind: input, shape index: {}]   ;;  %s1622_s2 = inlined_call_operand.hbm [shape: f32[48,128], index: 2, kind: input, shape index: {}]   ;;  %s1623_s3 = inlined_call_operand.hbm [shape: f32[48,128], index: 3, kind: input, shape index: {}]   ;;  %s1624_s4 = inlined_call_operand.vmem [shape: f32[1,128], index: 4, kind: input, shape index: {}]   ;;  %s1625_s5 = inlined_call_operand.vmem [shape: f32[1,128], index: 5, kind: input, shape index: {}]   ;;  %s1626_s6 = inlined_call_operand.vmem [shape: f32[1,128], index: 6, kind: input, shape index: {}]   ;;  %s1627_s7 = inlined_call_operand.hbm [shape: f32[128,128], index: 7, kind: input, shape index: {}]   ;;  %s1628_s8 = inlined_call_operand.vmem [shape: f32[1,128], index: 8, kind: input, shape index: {}]   ;;  %s1629_s9 = inlined_call_operand.hbm [shape: f32[8,128], index: 9, kind: output, shape index: {}]  }
   0x1   :  { %15 = vsyncpa [#allocation8], 0 }
   0x2   :  { %16 = vsyncpa [#allocation11], 0 }
   0x3   :  { %17 = vsyncpa [#allocation6], 0 }
   0x4   :  { %19 = vsyncpa [#allocation6 + $0x1], 0  ;;  %s1397_s30 = smov 0   ;;  %s1399_s10 = smov 0  }
   0x5   :  { %s1401_s11 = smov 0  }
   0x6 LB: > { %s1332_s12 = smov [#allocation7]   ;;  %s1633_s14 = sadd.s32 4294967295, %s1330_s11   ;;  %s1330_s11 = sphi %s1401_s11, %s25_s11   ;;  %s1326_s10 = sphi %s1399_s10, %s1650_s10   ;;  %s1322_s30 = sphi %s1397_s30, %s1649_s30  }
   0x7   : > { %s297_s13 = sshll.u32 %s1332_s12, 4  ;;  %p868_p0 = scmp.ge.s32.totalorder %s1330_s11, 1  ;;  %s298_s13 = int_to_ptr.vmem [resolvable:$true] %s297_s13 }
   0x8   : > { %p269_p1 = scmp.lt.s32.totalorder %s1330_s11, 3  ;;  %p1418_p2 = scmp.eq.s32.totalorder %s1633_s14, 0 }
   0x9   : > { %s1333_s18 = smov [#allocation10]   ;;  %s1126_s23 = scalar_lea.hbm %s1621_s1, 128 }
   0xa   : > { %s1638_s16 = scalar_select %p1418_p2, 1, 0 }
   0xb   : > { %p1422_p3 = pnand %p868_p0, %p269_p1  ;;  %s320_s19 = sshll.u32 %s1333_s18, 4  ;;  %s1434_s19 = int_to_ptr.vmem [resolvable:$true] %s320_s19 }
   0xc   : > { %p1127_p6 = scmp.ne.s32.totalorder %s1621_s1, %s1126_s23  ;;  %p1133_p10 = scmp.lt.u32.totalorder %s1126_s23, %s1621_s1 }
   0xd   : > { %s1639_s17 = scalar_select %p1422_p3, 1, 0 }
   0xe   : > { %p1052_p4 = pneg %p1422_p3 }
  0x10   : > { %p1430_p5 = pnand %p1418_p2, %p1052_p4 }
  0x12   : > { %p1444_p7 = pneg %p1430_p5 }
  0x14   : > { %p1129_p8 = pnand %p1444_p7, %p1127_p6 }
  0x16   : > { %p1130_p9 = pneg %p1129_p8 }
  0x18   : > { %p1135_p11 = pnand %p1133_p10, %p1130_p9 }
  0x1a   : > { %1138 = shalt.err (!%p1135_p11)
}
  0x1b   : > { %s1139_s29 = scalar_lea.vmem %s298_s13, 128  ;;  %p1147_p1 = scmp.lt.s32.totalorder %s298_s13, %s298_s13 }
  0x1c   : > { %p1140_p12 = scmp.ne.s32.totalorder %s298_s13, %s1139_s29  ;;  %p1148_p4 = scmp.lt.s32.totalorder %s1139_s29, %s1139_s29 }
  0x1e   : > { %p1142_p13 = pnand %p1140_p12, %p1444_p7  ;;  %p1149_p2 = por %p1148_p4, %p1147_p1 }
  0x20   : > { %p1143_p0 = pneg %p1142_p13 }
  0x22   : > { %p1150_p3 = pnand %p1149_p2, %p1143_p0 }
  0x24   : > { %1153 = shalt.err (!%p1150_p3)
}
  0x25   : > { %1058 = dma.hbm_to_vmem [thread:$0]  (!%p1430_p5), %s1621_s1, 128, %s298_s13, [#allocation8]  }
  0x26   : > { %s1154_s23 = scalar_lea.hbm %s1623_s3, 768 }
  0x27   : > { %p1155_p6 = scmp.ne.s32.totalorder %s1623_s3, %s1154_s23  ;;  %p1161_p2 = scmp.lt.u32.totalorder %s1154_s23, %s1623_s3 }
  0x29   : > { %p1157_p8 = pnand %p1155_p6, %p1444_p7 }
  0x2b   : > { %p1158_p9 = pneg %p1157_p8 }
  0x2d   : > { %p1163_p3 = pnand %p1161_p2, %p1158_p9 }
  0x2f   : > { %1166 = shalt.err (!%p1163_p3)
}
  0x30   : > { %s1167_s13 = scalar_lea.vmem %s1434_s19, 768  ;;  %p1175_p13 = scmp.lt.s32.totalorder %s1434_s19, %s1434_s19 }
  0x31   : > { %p1168_p10 = scmp.ne.s32.totalorder %s1434_s19, %s1167_s13  ;;  %p1176_p0 = scmp.lt.s32.totalorder %s1167_s13, %s1167_s13 }
  0x33   : > { %p1170_p11 = pnand %p1168_p10, %p1444_p7  ;;  %p1177_p1 = por %p1176_p0, %p1175_p13 }
  0x35   : > { %p1171_p12 = pneg %p1170_p11 }
  0x37   : > { %p1178_p4 = pnand %p1177_p1, %p1171_p12 }
  0x39   : > { %1181 = shalt.err (!%p1178_p4)
}
  0x3a   : > { %s1634_s29 = smov 128   ;;  %s1636_s12 = smov 8  }
  0x3b   : > { %1064 = dma.hbm_to_vmem [thread:$0]  (!%p1430_p5), %s1623_s3, 768, %s1434_s19, [#allocation11], %s1634_s29, %s1634_s29, %s1636_s12  }
  0x3c   : > { %s37_s22 = sadd.s32 1, %s1326_s10  ;;  %s1336_s23 = smov [#allocation4]  }
  0x3d   : > { %p39_p6 = scmp.ge.s32.totalorder %s37_s22, 2  ;;  %s284_s24 = sshll.u32 %s1336_s23, 4  ;;  %s285_s24 = int_to_ptr.vmem [resolvable:$true] %s284_s24 }
  0x3e   : > { %s1182_s28 = scalar_lea.hbm %s1620_s0, 128 }
  0x3f   : > { %s1652_s22 = smov (%p39_p6, %s37_s22), 0  ;;  %p1183_p8 = scmp.ne.s32.totalorder %s1620_s0, %s1182_s28 }
  0x40   : > { %p1189_p3 = scmp.lt.u32.totalorder %s1182_s28, %s1620_s0 }
  0x41   : > { %p1185_p9 = pnand %p1183_p8, %p1444_p7 }
  0x43   : > { %p1186_p2 = pneg %p1185_p9 }
  0x45   : > { %p1191_p10 = pnand %p1189_p3, %p1186_p2 }
  0x47   : > { %1194 = shalt.err (!%p1191_p10)
}
  0x48   : > { %s1195_s21 = scalar_lea.vmem %s285_s24, 128  ;;  %p1203_p0 = scmp.lt.s32.totalorder %s285_s24, %s285_s24 }
  0x49   : > { %p1196_p11 = scmp.ne.s32.totalorder %s285_s24, %s1195_s21  ;;  %p1204_p1 = scmp.lt.s32.totalorder %s1195_s21, %s1195_s21 }
  0x4b   : > { %p1198_p12 = pnand %p1196_p11, %p1444_p7  ;;  %p1205_p4 = por %p1204_p1, %p1203_p0 }
  0x4d   : > { %p1199_p13 = pneg %p1198_p12 }
  0x4f   : > { %p1206_p6 = pnand %p1205_p4, %p1199_p13 }
  0x51   : > { %1209 = shalt.err (!%p1206_p6)
}
  0x52   : > { %1055 = dma.hbm_to_vmem [thread:$0]  (!%p1430_p5), %s1620_s0, 128, %s285_s24, [#allocation5]  }
  0x53   : > { %s1337_s25 = smov [#allocation9]   ;;  %s1338_s28 = smov [#allocation12]  }
  0x54   : > { %s307_s27 = sshll.u32 %s1337_s25, 4  ;;  %s342_s13 = sshll.u32 %s1338_s28, 4  ;;  %s308_s27 = int_to_ptr.vmem [resolvable:$true] %s307_s27  ;;  %s343_s13 = int_to_ptr.vmem [resolvable:$true] %s342_s13 }
  0x55   : > { %s1210_s14 = scalar_lea.hbm %s1622_s2, 768 }
  0x56   : > { %p1211_p8 = scmp.ne.s32.totalorder %s1622_s2, %s1210_s14  ;;  %p1217_p3 = scmp.lt.u32.totalorder %s1210_s14, %s1622_s2 }
  0x58   : > { %p1213_p9 = pnand %p1211_p8, %p1444_p7 }
  0x5a   : > { %p1214_p2 = pneg %p1213_p9 }
  0x5c   : > { %p1219_p10 = pnand %p1217_p3, %p1214_p2 }
  0x5e   : > { %1222 = shalt.err (!%p1219_p10)
}
  0x5f   : > { %s1223_s24 = scalar_lea.vmem %s308_s27, 768  ;;  %p1231_p0 = scmp.lt.s32.totalorder %s308_s27, %s308_s27 }
  0x60   : > { %p1224_p11 = scmp.ne.s32.totalorder %s308_s27, %s1223_s24  ;;  %p1232_p1 = scmp.lt.s32.totalorder %s1223_s24, %s1223_s24 }
  0x62   : > { %p1226_p12 = pnand %p1224_p11, %p1444_p7  ;;  %p1233_p4 = por %p1232_p1, %p1231_p0 }
  0x64   : > { %p1227_p13 = pneg %p1226_p12 }
  0x66   : > { %p1234_p6 = pnand %p1233_p4, %p1227_p13 }
  0x68   : > { %1237 = shalt.err (!%p1234_p6)
}
  0x69   : > { %s1642_s29 = smov 8   ;;  %s1643_s23 = smov 128  }
  0x6a   : > { %1061 = dma.hbm_to_vmem [thread:$0]  (!%p1430_p5), %s1622_s2, 768, %s308_s27, [#allocation8], %s1643_s23, %s1643_s23, %s1642_s29  }
  0x6b   : > { %s1238_s18 = scalar_lea.hbm %s1627_s7, 2048 }
  0x6c   : > { %p1239_p8 = scmp.ne.s32.totalorder %s1627_s7, %s1238_s18  ;;  %p1245_p3 = scmp.lt.u32.totalorder %s1238_s18, %s1627_s7 }
  0x6e   : > { %p1241_p9 = pnand %p1239_p8, %p1444_p7 }
  0x70   : > { %p1242_p2 = pneg %p1241_p9 }
  0x72   : > { %p1247_p10 = pnand %p1245_p3, %p1242_p2 }
  0x74   : > { %1250 = shalt.err (!%p1247_p10)
}
  0x75   : > { %s1251_s12 = scalar_lea.vmem %s343_s13, 2048  ;;  %p1259_p0 = scmp.lt.s32.totalorder %s343_s13, %s343_s13 }
  0x76   : > { %p1252_p11 = scmp.ne.s32.totalorder %s343_s13, %s1251_s12  ;;  %p1260_p1 = scmp.lt.s32.totalorder %s1251_s12, %s1251_s12 }
  0x78   : > { %p1254_p12 = pnand %p1252_p11, %p1444_p7  ;;  %p1261_p4 = por %p1260_p1, %p1259_p0 }
  0x7a   : > { %p1255_p13 = pneg %p1254_p12 }
  0x7c   : > { %p1262_p6 = pnand %p1261_p4, %p1255_p13 }
  0x7e   : > { %1265 = shalt.err (!%p1262_p6)
}
  0x7f   : > { %1067 = dma.hbm_to_vmem [thread:$0]  (!%p1430_p5), %s1627_s7, 2048, %s343_s13, [#allocation11], %s1643_s23, %s1643_s23, %s1642_s29  }
  0x80   : > { %p1644_p8 = scmp.ne.s32.totalorder %s1639_s17, 0 }
  0x81   : > { %p1645_p7 = scmp.ne.s32.totalorder (!%p1644_p8), %s1638_s16, 0 }
  0x82   : > { %361 = sbr.rel (%p1644_p8) target bundleno = 664 (0x298), region = 56 }
  0x89   : > { %1305 = dma.done.wait (%p1645_p7), [#allocation5], 128  }
  0x8a   : > { %1307 = vsyncadd (%p1645_p7), [#allocation5], 4294967168 }
  0x8b   : > { %1309 = dma.done.wait (%p1645_p7), [#allocation8], 896  }
  0x8c   : > { %1311 = vsyncadd (%p1645_p7), [#allocation8], 4294966400 }
  0x8d   : > { %1313 = dma.done.wait (%p1645_p7), [#allocation11], 2816  }
  0x8e   : > { %1315 = vsyncadd (%p1645_p7), [#allocation11], 4294964480  ;;  %v1339_v0 = vmov 0.0|0.0   ;;  %vm1340_vm0 = vmmov 0   ;;  %v1341_v1 = vmov 0.0   ;;  %v417_v2 = vld [vmem:[#allocation10] sm:$0xff] }
  0x8f   : > { %986 = vmatprep.subr.bf16.mxu0 %v1339_v0  ;;  %995 = vmatprep.subr.bf16.mxu1 %v1339_v0  ;;  %v418_v3 = vld [vmem:[#allocation10 + $0x8] sm:$0xff]  ;;  %v411_v4 = vld [vmem:[#allocation9] sm:$0xff]  ;;  %v412_v6 = vld [vmem:[#allocation9 + $0x8] sm:$0xff]  ;;  %vm423_vm1 = vcmask 392192   ;;  %p883_p5 = scmp.ne.s32.totalorder %s1322_s30, 0 }
  0x90   : > { %933 = vmatprep.mubr.msk.f32.mxu0 %vm1340_vm0, %v1341_v1  ;;  %948 = vmatprep.mubr.msk.f32.mxu1 %vm1340_vm0, %v1341_v1  ;;  %v987_v5 = vpack.c.bf16 %v418_v3, %v417_v2  ;;  %v419_v7 = vld [vmem:[#allocation10 + $0x10] sm:$0xff]  ;;  %v420_v8 = vld [vmem:[#allocation10 + $0x18] sm:$0xff]  ;;  %v996_v9 = vpack.c.bf16 %v412_v6, %v411_v4  ;;  %v413_v10 = vld [vmem:[#allocation9 + $0x10] sm:$0xff]  ;;  %v1342_v31 = vmov (!%p883_p5), 0.0  }
  0x91   : > { %v414_v11 = vld [vmem:[#allocation9 + $0x18] sm:$0xff]  ;;  %v990_v12 = vpack.c.bf16 %v420_v8, %v419_v7  ;;  %v421_v14 = vld [vmem:[#allocation10 + $0x20] sm:$0xff]  ;;  %v415_v16 = vld [vmem:[#allocation9 + $0x20] sm:$0xff]  ;;  %586 = vst [vmem:[#allocation2] sm:$0x1] (!%p883_p5), %v1342_v31 }
  0x92   : > { %988 = vmatpush3.bf16.msra.mxu0 %v987_v5  ;;  %997 = vmatpush3.bf16.msra.mxu1 %v996_v9  ;;  %v999_v13 = vpack.c.bf16 %v414_v11, %v413_v10  ;;  %v422_v15 = vld [vmem:[#allocation10 + $0x28] sm:$0xff]  ;;  %v416_v17 = vld [vmem:[#allocation9 + $0x28] sm:$0xff]  ;;  %v409_v21 = vld [vmem:[#allocation4] sm:$0xff]  ;;  %587 = vst [vmem:[#allocation3] sm:$0x1] (!%p883_p5), %v1342_v31 }
  0x93   : > { %989 = vmatprep.subr.bf16.mxu0 %v1339_v0  ;;  %998 = vmatprep.subr.bf16.mxu1 %v1339_v0  ;;  %v993_v18 = vpack.c.bf16 %v422_v15, %v421_v14  ;;  %v1002_v19 = vpack.c.bf16 %v416_v17, %v415_v16  ;;  %v410_v20 = vld [vmem:[#allocation7] sm:$0xff]  ;;  %v882_v24 = vld [vmem:[%s1624_s4] ss:$0 sm:$0xff] }
  0x96   : > { %991 = vmatpush3.bf16.msra.mxu0 %v990_v12  ;;  %1000 = vmatpush3.bf16.msra.mxu1 %v999_v13 }
  0x97   : > { %992 = vmatprep.subr.bf16.mxu0 %v1339_v0  ;;  %1001 = vmatprep.subr.bf16.mxu1 %v1339_v0 }
  0x98   : > { %v597_v40 = vld [vmem:[#allocation2] sm:$0x1] (!%p883_p5) }
  0x99   : > { %v606_v43 = vld [vmem:[#allocation3] sm:$0x1] (!%p883_p5) }
  0x9a   : > { %994 = vmatpush3.bf16.msra.mxu0 %v993_v18  ;;  %1003 = vmatpush3.bf16.msra.mxu1 %v1002_v19 }
  0x9d   : > { %934 = vmatmul.mubr.msk.f32.vlgmr.msra.gmra.mrb[0].mxu0 %vm423_vm1, %v410_v20  ;;  %949 = vmatmul.mubr.msk.f32.vlgmr.msra.gmra.mrb[0].mxu1 %vm423_vm1, %v409_v21 }
 0x16d   : > { %581 = sbr.rel (%p883_p5) target bundleno = 390 (0x186), region = 80 }
 0x170   : > { %v493_v22 = vpop.f32.mrb[0].mxu0  ;;  %v566_v23 = vpop.f32.mrb[0].mxu1 }
 0x171   : > { %v935_v25 = vpop.f32.mrb[1].mxu0  ;;  %v567_v26 = vadd.f32 %v566_v23, %v493_v22  ;;  %v950_v27 = vpop.f32.mrb[1].mxu1 }
 0x173   : > { %v1566_v28 = vadd.f32 %v882_v24, %v567_v26 }
 0x175   : > { %v598_v29 = vrot.slane %v1566_v28, 4  ;;  %v607_v30 = vmul.f32 %v1566_v28, %v1566_v28 }
 0x177   : > { %v599_v32 = vadd.f32 %v598_v29, %v1566_v28  ;;  %v608_v33 = vrot.slane %v607_v30, 4 }
 0x179   : > { %v600_v34 = vrot.slane %v599_v32, 2  ;;  %v609_v35 = vadd.f32 %v608_v33, %v607_v30 }
 0x17b   : > { %v601_v36 = vadd.f32 %v600_v34, %v599_v32  ;;  %v610_v37 = vrot.slane %v609_v35, 2 }
 0x17d   : > { %v602_v38 = vrot.slane %v601_v36, 1  ;;  %v611_v39 = vadd.f32 %v610_v37, %v609_v35 }
 0x17f   : > { %v603_v41 = vadd.f32 %v602_v38, %v601_v36  ;;  %v612_v42 = vrot.slane %v611_v39, 1 }
 0x181   : > { %v604_v44 = vadd.f32 %v603_v41, %v597_v40  ;;  %v613_v45 = vadd.f32 %v612_v42, %v611_v39 }
 0x183   : > { %605 = vst [vmem:[#allocation2] sm:$0x1] %v604_v44  ;;  %v614_v46 = vadd.f32 %v613_v45, %v606_v43 }
 0x185   : > { %615 = vst [vmem:[#allocation3] sm:$0x1] %v614_v46 }
 0x186 PF: > { %p884_p9 = scmp.ne.s32.totalorder %s1322_s30, 1 }
 0x187   : > { %v648_v47 = vld [vmem:[#allocation12] sm:$0xff] (!%p884_p9)  ;;  %v649_v48 = vld [vmem:[#allocation12 + $0x8] sm:$0xff] (!%p884_p9)  ;;  %v650_v49 = vld [vmem:[#allocation12 + $0x10] sm:$0xff] (!%p884_p9)  ;;  %v1343_v50 = vmov (!%p884_p9), 0.0|0.0   ;;  %vm1344_vm2 = vmmov (!%p884_p9), 0   ;;  %v1345_v53 = vmov (!%p884_p9), 0.0   ;;  %v634_v7 = vlaneseq (!%p884_p9) }
 0x188   : > { %619 = sbr.rel (%p884_p9) target bundleno = 641 (0x281), region = 88  ;;  %1004 = vmatprep.subr.bf16.mxu0 (!%p884_p9), %v1343_v50  ;;  %v1005_v51 = vpack.c.bf16 (!%p884_p9), %v649_v48, %v648_v47  ;;  %v651_v52 = vld [vmem:[#allocation12 + $0x18] sm:$0xff] (!%p884_p9)  ;;  %983 = vmatprep.mubr.msk.f32.mxu0 (!%p884_p9), %vm1344_vm2, %v1345_v53  ;;  %v652_v55 = vld [vmem:[#allocation12 + $0x20] sm:$0xff] (!%p884_p9)  ;;  %v653_v56 = vld [vmem:[#allocation12 + $0x28] sm:$0xff] (!%p884_p9) }
 0x189   : > { %v1008_v54 = vpack.c.bf16 (!%p884_p9), %v651_v52, %v650_v49  ;;  %v1011_v61 = vpack.c.bf16 (!%p884_p9), %v653_v56, %v652_v55  ;;  %v654_v62 = vld [vmem:[#allocation12 + $0x30] sm:$0xff] (!%p884_p9)  ;;  %v655_v63 = vld [vmem:[#allocation12 + $0x38] sm:$0xff] (!%p884_p9)  ;;  %v656_v3 = vld [vmem:[#allocation12 + $0x40] sm:$0xff] (!%p884_p9)  ;;  %v635_v11 = vshrl.u32 (!%p884_p9), %v634_v7, 7 }
 0x18a   : > { %1006 = vmatpush3.bf16.msra.mxu0 (!%p884_p9), %v1005_v51  ;;  %v620_v57 = vld [vmem:[#allocation2] sm:$0x1] (!%p884_p9)  ;;  %v1014_v2 = vpack.c.bf16 (!%p884_p9), %v655_v63, %v654_v62  ;;  %v658_v8 = vld [vmem:[#allocation12 + $0x50] sm:$0xff] (!%p884_p9)  ;;  %v659_v9 = vld [vmem:[#allocation12 + $0x58] sm:$0xff] (!%p884_p9) }
 0x18b   : > { %1007 = vmatprep.subr.bf16.mxu0 (!%p884_p9), %v1343_v50  ;;  %v621_v59 = vmul.f32 (!%p884_p9), 0.125, %v620_v57  ;;  %v657_v4 = vld [vmem:[#allocation12 + $0x48] sm:$0xff] (!%p884_p9)  ;;  %v1020_v10 = vpack.c.bf16 (!%p884_p9), %v659_v9, %v658_v8  ;;  %v660_v12 = vld [vmem:[#allocation12 + $0x60] sm:$0xff] (!%p884_p9)  ;;  %v636_v16 = vsub.s32 (!%p884_p9), 0, %v635_v11  ;;  %v662_v18 = vld [vmem:[#allocation12 + $0x70] sm:$0xff] (!%p884_p9) }
 0x18c   : > { %v622_v58 = vld [vmem:[#allocation3] sm:$0x1] (!%p884_p9)  ;;  %v1017_v6 = vpack.c.bf16 (!%p884_p9), %v657_v4, %v656_v3  ;;  %v626_v14 = vld [vmem:[%s1625_s5] sm:$0x1] (!%p884_p9)  ;;  %v663_v19 = vld [vmem:[#allocation12 + $0x78] sm:$0xff] (!%p884_p9) }
 0x18d   : > { %v623_v60 = vmul.f32 (!%p884_p9), 0.125, %v622_v58  ;;  %v624_v0 = vmul.f32 (!%p884_p9), %v621_v59, %v621_v59  ;;  %v661_v13 = vld [vmem:[#allocation12 + $0x68] sm:$0xff] (!%p884_p9)  ;;  %v1026_v22 = vpack.c.bf16 (!%p884_p9), %v663_v19, %v662_v18 }
 0x18e   : > { %1009 = vmatpush3.bf16.msra.mxu0 (!%p884_p9), %v1008_v54  ;;  %v1023_v15 = vpack.c.bf16 (!%p884_p9), %v661_v13, %v660_v12  ;;  %v630_v21 = vld [vmem:[%s1626_s6] sm:$0x1] (!%p884_p9) }
 0x18f   : > { %1010 = vmatprep.subr.bf16.mxu0 %v1343_v50  ;;  %v625_v1 = vsub.f32 %v623_v60, %v624_v0  ;;  %v885_v31 = vld [vmem:[%s1628_s8] ss:$0 sm:$0xff] }
 0x191   : > { %v627_v5 = vadd.f32 1e-05, %v625_v1 }
 0x192   : > { %1012 = vmatpush3.bf16.msra.mxu0 %v1011_v61 }
 0x193   : > { %1013 = vmatprep.subr.bf16.mxu0 %v1343_v50  ;;  %1124 = vrsqrt.f32 %v627_v5 }
 0x196   : > { %1015 = vmatpush3.bf16.msra.mxu0 %v1014_v2 }
 0x197   : > { %1016 = vmatprep.subr.bf16.mxu0 %v1343_v50 }
 0x19a   : > { %1018 = vmatpush3.bf16.msra.mxu0 %v1017_v6 }
 0x19b   : > { %1019 = vmatprep.subr.bf16.mxu0 %v1343_v50 }
 0x19d   : > { %v1125_v17 = vpop.eup %1124 }
 0x19e   : > { %1021 = vmatpush3.bf16.msra.mxu0 %v1020_v10  ;;  %v629_v20 = vmul.f32 %v1125_v17, %v626_v14 }
 0x19f   : > { %1022 = vmatprep.subr.bf16.mxu0 %v1343_v50 }
 0x1a0   : > { %v631_v23 = vmul.f32 %v629_v20, %v621_v59  ;;  %v637_v24 = vrot.slane %v629_v20, %v636_v16 }
 0x1a2   : > { %1024 = vmatpush3.bf16.msra.mxu0 %v1023_v15  ;;  %v632_v25 = vsub.f32 %v630_v21, %v631_v23  ;;  %v639_v26 = vmul.f32 %v637_v24, %v1566_v28 }
 0x1a3   : > { %1025 = vmatprep.subr.bf16.mxu0 %v1343_v50 }
 0x1a4   : > { %v644_v27 = vrot.slane %v632_v25, %v636_v16 }
 0x1a6   : > { %1027 = vmatpush3.bf16.msra.mxu0 %v1026_v22  ;;  %v646_v29 = vadd.f32 %v644_v27, %v639_v26 }
 0x1a8   : > { %v647_v30 = vmax.f32 %v646_v29, 0.0 }
 0x1aa   : > { %984 = vmatmul.mubr.f32.vlgmr.msra.gmra.mrb[0].mxu0 %v647_v30 }
 0x27d   : > { %v737_v32 = vpop.f32.mrb[0].mxu0 }
 0x27e   : > { %v738_v33 = vadd.f32 %v885_v31, %v737_v32  ;;  %v985_v34 = vpop.f32.mrb[1].mxu0 }
 0x280   : > { %741 = vst [vmem:[#allocation13] sm:$0xff] %v738_v33 }
 0x281 PF: > { %s1646_s25 = sadd.s32 4294967295, %s1330_s11   ;;  %s1346_s18 = smov [#allocation13]  }
 0x282   : > { %p1586_p2 = scmp.eq.s32.totalorder %s1646_s25, 1  ;;  %s757_s19 = sshll.u32 %s1346_s18, 4  ;;  %s758_s19 = int_to_ptr.vmem [resolvable:$true] %s757_s19 }
 0x283   : > { %s1266_s21 = scalar_lea.vmem %s758_s19, 128  ;;  %s1272_s15 = scalar_lea.vmem %s758_s19, 256 }
 0x284   : > { %p1267_p3 = scmp.ne.s32.totalorder %s758_s19, %s1266_s21  ;;  %p1273_p12 = scmp.lt.s32.totalorder %s758_s19, %s758_s19 }
 0x285   : > { %p1274_p13 = scmp.lt.s32.totalorder %s1272_s15, %s1266_s21 }
 0x286   : > { %p1268_p10 = pnand %p1267_p3, %p1586_p2 }
 0x287   : > { %p1275_p0 = por %p1274_p13, %p1273_p12 }
 0x288   : > { %p1269_p11 = pneg %p1268_p10 }
 0x28a   : > { %p1276_p1 = pnand %p1275_p0, %p1269_p11 }
 0x28c   : > { %1279 = shalt.err (!%p1276_p1)
}
 0x28d   : > { %s1280_s27 = scalar_lea.hbm %s1629_s9, 128 }
 0x28e   : > { %p1281_p4 = scmp.ne.s32.totalorder %s1629_s9, %s1280_s27  ;;  %p1286_p7 = scmp.lt.u32.totalorder %s1280_s27, %s1629_s9 }
 0x290   : > { %p1282_p6 = pnand %p1281_p4, %p1586_p2 }
 0x292   : > { %p1283_p8 = pneg %p1282_p6 }
 0x294   : > { %p1288_p5 = pnand %p1286_p7, %p1283_p8 }
 0x296   : > { %1291 = shalt.err (!%p1288_p5)
}
 0x297   : > { %1049 = dma.vmem_to_hbm [thread:$0]  (%p1586_p2), %s758_s19, 128, %s1629_s9, [#allocation6]  }
 0x298 PF: > { %p1083_p9 = scmp.ge.s32.totalorder %s1330_s11, 2  ;;  %s1648_s13 = sadd.s32 4294967294, %s1330_s11  }
 0x299   : > { %p1084_p3 = scmp.eq.s32.totalorder %s1648_s13, 1 }
 0x29b   : > { %p1069_p10 = pnand %p1084_p3, %p1083_p9 }
 0x29d   : > { %1317 = dma.done.wait (!%p1069_p10), [#allocation6], 128  }
 0x29e   : > { %1319 = vsyncadd (!%p1069_p10), [#allocation6], 4294967168  ;;  %s25_s11 = sadd.s32 1, %s1330_s11   ;;  %s1649_s30 = smov %s1326_s10 }
 0x29f   : > { %p22_p11 = scmp.ge.s32.totalorder %s25_s11, 4   ;;  %s1650_s10 = smov %s1652_s22 }
 0x2a1   :  { %24 = sbr.rel (!%p22_p11) target bundleno = 6 (0x6), region = 123 }
 0x2a8   :  { %775 = vsyncpa [#allocation5], 1 }
 0x2a9   :  { %777 = vsyncpa [#allocation5 + $0x1], 1 }
 0x2aa   :  { %778 = vsyncpa [#allocation8], 1 }
 0x2ab   :  { %779 = vsyncpa [#allocation11], 1 }
 0x2ac   :  { %780 = vsyncpa [#allocation6], 1 }
 0x2ad   :  { %782 = vsyncpa [#allocation6 + $0x1], 1 }

</bundles_post_ra>
